<compile_context>
chip_gen: v7x
topology: tpu7x:2x2x1
jax: 0.10.0
libtpu: 0.0.40
codegen_flags: <defaults>
</compile_context>

<pallas_src>
import jax
import jax.numpy as jnp
from jax.experimental import pallas as pl
from jax.experimental.pallas import tpu as pltpu


def _round_up(v, m):
    return (v + m - 1) // m * m


def rbf_kernel(x_ref, cts_ref, ninv_ref, d2_ref, wt_ref, b_ref, o_ref):
    x = x_ref[...]                                               # (TILE_N, D) f32

    # ||x||^2 per row: XLU lane-reduce over D (own bundle slot, cheap at D=16).
    x2 = jnp.sum(x * x, axis=-1, keepdims=True)                  # (TILE_N, 1)

    # Cross term on the MXU (f32: feeds exp, accuracy-critical, D=16 is tiny).
    xc = jnp.dot(x, cts_ref[...],
                 preferred_element_type=jnp.float32)             # (TILE_N, K_pad)

    # s = -r / (2|sigma|); 3 VALU ops/elem, then exp on the EUP (the floor).
    s = xc + x2 * ninv_ref[...] + d2_ref[...]
    phi = jnp.exp(s)                                             # (TILE_N, K_pad)

    # K-contraction on the MXU in bf16 with f32 accumulation.
    out = jnp.dot(phi.astype(jnp.bfloat16), wt_ref[...],
                  preferred_element_type=jnp.float32) + b_ref[...]
    o_ref[...] = out.astype(o_ref.dtype)                         # (TILE_N, O) store


def rbf_forward(x, C, sigma_square, w, b, *, tile_n_max=1024):
    """x: (N, D); C: (1, K, D); sigma_square: (1, K); w: (1, O, K); b: (1, O, 1)."""
    N, D = x.shape
    K = C.shape[1]
    O = w.shape[1]

    # Lane-pad K for an unmasked phi slab / full MXU columns.  O is NOT padded:
    # the narrow masked store is far cheaper than a 128-wide HBM writeback when
    # O is small (pad O only if it is large and close to a 128 multiple).
    K_pad = _round_up(K, 128)
    pad_k = ((0, 0), (0, K_pad - K))

    # Hoisted per-K constants (computed once, outside the grid loop).
    ninv = (-0.5 / jnp.abs(sigma_square)).astype(jnp.float32)        # (1, K)
    ct = jnp.transpose(C[0], (1, 0)).astype(jnp.float32)             # (D, K)
    cts = ct * (-2.0 * ninv)                                         # (D, K)
    d2 = jnp.sum(ct * ct, axis=0, keepdims=True) * ninv              # (1, K)

    cts = jnp.pad(cts, ((0, 0), (0, K_pad - K)))                     # zero cols
    ninv = jnp.pad(ninv, pad_k)
    d2 = jnp.pad(d2, pad_k)
    wt = jnp.pad(jnp.transpose(w[0], (1, 0)),
                 ((0, K_pad - K), (0, 0))).astype(jnp.bfloat16)      # (K_pad, O)
    bb = jnp.reshape(b[0], (1, O)).astype(jnp.float32)               # (1, O)

    # Batch tiling: aim for >= 2 grid steps (v7x megacore), cap the tile to
    # amortize per-step overhead, never (needlessly) exceed N.  The ragged last
    # block is handled by Pallas masking; no wrapper pad of x, no output slice.
    tile_n = _round_up(max(pl.cdiv(N, 2), 1), 8)
    tile_n = min(tile_n, tile_n_max, _round_up(N, 8))
    grid_n = pl.cdiv(N, tile_n)

    out = pl.pallas_call(
        rbf_kernel,
        out_shape=jax.ShapeDtypeStruct((N, O), x.dtype),
        grid=(grid_n,),
        in_specs=[
            pl.BlockSpec((tile_n, D), lambda i: (i, 0)),     # x: streamed tiles
            pl.BlockSpec((D, K_pad), lambda i: (0, 0)),      # cts: resident
            pl.BlockSpec((1, K_pad), lambda i: (0, 0)),      # ninv
            pl.BlockSpec((1, K_pad), lambda i: (0, 0)),      # d2
            pl.BlockSpec((K_pad, O), lambda i: (0, 0)),      # wt: resident (bf16)
            pl.BlockSpec((1, O), lambda i: (0, 0)),          # bias
        ],
        out_specs=pl.BlockSpec((tile_n, O), lambda i: (i, 0)),
        compiler_params=pltpu.CompilerParams(
            dimension_semantics=("parallel",),               # megacore on v7x
            vmem_limit_bytes=32 * 1024 * 1024),              # v5e default is ~16 MiB
    )(x.astype(jnp.float32), cts, ninv, d2, wt, bb)
    return out


def rbf_reference(x, C, sigma_square, w, b):
    # Direct translation of the PyTorch forward for checking.
    diff = x[:, None, :] - C[0][None, :, :]                # (N, K, D)
    r = jnp.sum(diff * diff, axis=-1)                      # (N, K)
    phi = jnp.exp(-r / (2.0 * jnp.abs(sigma_square)))      # (N, K)
    return phi @ w[0].T + b[0, :, 0][None, :]              # (N, O)


if __name__ == "__main__":
    # Module hyper-parameters (small, TPU-tile friendly).  batch=24 exercises
    # both the multi-step grid and the ragged (masked) last block.
    input_dim = 16
    out_dim = 8
    kernel_num = 64
    batch = 24

    key = jax.random.PRNGKey(0)
    k_x, k_c, k_s, k_w, k_b = jax.random.split(key, 5)

    x = jax.random.normal(k_x, (batch, input_dim), dtype=jnp.float32)
    C = jax.random.normal(k_c, (1, kernel_num, input_dim), dtype=jnp.float32)
    sigma_square = jnp.abs(
        jax.random.normal(k_s, (1, kernel_num), dtype=jnp.float32)) + 0.1
    w = jax.random.normal(k_w, (1, out_dim, kernel_num), dtype=jnp.float32)
    b = jax.random.normal(k_b, (1, out_dim, 1), dtype=jnp.float32)

    out = rbf_forward(x, C, sigma_square, w, b)
    out = jax.block_until_ready(out)

    ref = rbf_reference(x, C, sigma_square, w, b)
    assert out.shape == (batch, out_dim)
    # Tolerance slightly looser than pure-f32 because phi/wt enter the second
    # matmul in bf16 (f32 accumulate); the exponent path stays f32.
    assert jnp.allclose(out, ref, rtol=2e-3, atol=2e-3), "mismatch vs reference"

    print("KERNEL_OK")
</pallas_src>

<mosaic_0001>
module attributes {stable_mosaic.version = 11 : i64} {
  func.func @rbf_kernel(%arg0: i32, %arg1: memref<16x16xf32, #tpu.memory_space<vmem>>, %arg2: memref<16x128xf32, #tpu.memory_space<vmem>>, %arg3: memref<1x128xf32, #tpu.memory_space<vmem>>, %arg4: memref<1x128xf32, #tpu.memory_space<vmem>>, %arg5: memref<128x8xbf16, #tpu.memory_space<vmem>>, %arg6: memref<1x8xf32, #tpu.memory_space<vmem>>, %arg7: memref<16x8xf32, #tpu.memory_space<vmem>>) attributes {dimension_semantics = [#tpu.dimension_semantics<parallel>], iteration_bounds = array<i64: 2>, scalar_prefetch = 0 : i64, scratch_operands = 0 : i64, tpu.core_type = #tpu.core_type<tc>, window_params = [{transform_indices = @transform_0, window_bounds = array<i64: 16, 16>}, {pipeline_mode = #tpu.pipeline_mode<synchronous>, transform_indices = @transform_1, window_bounds = array<i64: 16, 128>}, {pipeline_mode = #tpu.pipeline_mode<synchronous>, transform_indices = @transform_2, window_bounds = array<i64: 1, 128>}, {pipeline_mode = #tpu.pipeline_mode<synchronous>, transform_indices = @transform_3, window_bounds = array<i64: 1, 128>}, {pipeline_mode = #tpu.pipeline_mode<synchronous>, transform_indices = @transform_4, window_bounds = array<i64: 128, 8>}, {pipeline_mode = #tpu.pipeline_mode<synchronous>, transform_indices = @transform_5, window_bounds = array<i64: 1, 8>}, {transform_indices = @transform_6, window_bounds = array<i64: 16, 8>}]} {
    %c0 = arith.constant 0 : index
    %c0_0 = arith.constant 0 : index
    %0 = vector.load %arg1[%c0, %c0_0] : memref<16x16xf32, #tpu.memory_space<vmem>>, vector<16x16xf32>
    %1 = arith.mulf %0, %0 : vector<16x16xf32>
    %cst = arith.constant dense<0.000000e+00> : vector<16xf32>
    %2 = vector.multi_reduction <add>, %1, %cst [1] : vector<16x16xf32> to vector<16xf32>
    %3 = vector.shape_cast %2 : vector<16xf32> to vector<16x1xf32>
    %c0_1 = arith.constant 0 : index
    %c0_2 = arith.constant 0 : index
    %4 = vector.load %arg2[%c0_1, %c0_2] : memref<16x128xf32, #tpu.memory_space<vmem>>, vector<16x128xf32>
    %cst_3 = arith.constant dense<0.000000e+00> : vector<16x128xf32>
    %5 = tpu.matmul %0, %4, %cst_3 {dimension_numbers = #tpu.dot_dimension_numbers<[1], [0], [0], [1], [0, 0, 1, 1], [], []>} : vector<16x16xf32>, vector<16x128xf32>, vector<16x128xf32> -> vector<16x128xf32>
    %c0_4 = arith.constant 0 : index
    %c0_5 = arith.constant 0 : index
    %6 = vector.load %arg3[%c0_4, %c0_5] : memref<1x128xf32, #tpu.memory_space<vmem>>, vector<1x128xf32>
    %7 = vector.broadcast %3 : vector<16x1xf32> to vector<16x128xf32>
    %8 = vector.broadcast %6 : vector<1x128xf32> to vector<16x128xf32>
    %9 = arith.mulf %7, %8 : vector<16x128xf32>
    %10 = arith.addf %5, %9 : vector<16x128xf32>
    %c0_6 = arith.constant 0 : index
    %c0_7 = arith.constant 0 : index
    %11 = vector.load %arg4[%c0_6, %c0_7] : memref<1x128xf32, #tpu.memory_space<vmem>>, vector<1x128xf32>
    %12 = vector.broadcast %11 : vector<1x128xf32> to vector<16x128xf32>
    %13 = arith.addf %10, %12 : vector<16x128xf32>
    %14 = math.exp %13 : vector<16x128xf32>
    %15 = arith.truncf %14 : vector<16x128xf32> to vector<16x128xbf16>
    %c0_8 = arith.constant 0 : index
    %c0_9 = arith.constant 0 : index
    %16 = vector.load %arg5[%c0_8, %c0_9] : memref<128x8xbf16, #tpu.memory_space<vmem>>, vector<128x8xbf16>
    %cst_10 = arith.constant dense<0.000000e+00> : vector<16x8xf32>
    %17 = tpu.matmul %15, %16, %cst_10 {dimension_numbers = #tpu.dot_dimension_numbers<[1], [0], [0], [1], [0, 0, 1, 1], [], []>} : vector<16x128xbf16>, vector<128x8xbf16>, vector<16x8xf32> -> vector<16x8xf32>
    %c0_11 = arith.constant 0 : index
    %c0_12 = arith.constant 0 : index
    %18 = vector.load %arg6[%c0_11, %c0_12] : memref<1x8xf32, #tpu.memory_space<vmem>>, vector<1x8xf32>
    %19 = vector.broadcast %18 : vector<1x8xf32> to vector<16x8xf32>
    %20 = arith.addf %17, %19 : vector<16x8xf32>
    %c0_13 = arith.constant 0 : index
    %c0_14 = arith.constant 0 : index
    %21 = vector.load %arg7[%c0_13, %c0_14] : memref<16x8xf32, #tpu.memory_space<vmem>>, vector<16x8xf32>
    tpu.vector_store %arg7[%c0_13, %c0_14], %20 {strides = array<i32>} : memref<16x8xf32, #tpu.memory_space<vmem>>, vector<16x8xf32>,
    return
  }
  func.func @transform_0(%arg0: i32) -> (i32, i32) {
    %c0_i32 = arith.constant 0 : i32
    %c0_i32_0 = arith.constant 0 : i32
    return %arg0, %c0_i32 : i32, i32
  }
  func.func @transform_1(%arg0: i32) -> (i32, i32) {
    %c0_i32 = arith.constant 0 : i32
    %c0_i32_0 = arith.constant 0 : i32
    %c0_i32_1 = arith.constant 0 : i32
    return %c0_i32, %c0_i32_0 : i32, i32
  }
  func.func @transform_2(%arg0: i32) -> (i32, i32) {
    %c0_i32 = arith.constant 0 : i32
    %c0_i32_0 = arith.constant 0 : i32
    %c0_i32_1 = arith.constant 0 : i32
    return %c0_i32, %c0_i32_0 : i32, i32
  }
  func.func @transform_3(%arg0: i32) -> (i32, i32) {
    %c0_i32 = arith.constant 0 : i32
    %c0_i32_0 = arith.constant 0 : i32
    %c0_i32_1 = arith.constant 0 : i32
    return %c0_i32, %c0_i32_0 : i32, i32
  }
  func.func @transform_4(%arg0: i32) -> (i32, i32) {
    %c0_i32 = arith.constant 0 : i32
    %c0_i32_0 = arith.constant 0 : i32
    %c0_i32_1 = arith.constant 0 : i32
    return %c0_i32, %c0_i32_0 : i32, i32
  }
  func.func @transform_5(%arg0: i32) -> (i32, i32) {
    %c0_i32 = arith.constant 0 : i32
    %c0_i32_0 = arith.constant 0 : i32
    %c0_i32_1 = arith.constant 0 : i32
    return %c0_i32, %c0_i32_0 : i32, i32
  }
  func.func @transform_6(%arg0: i32) -> (i32, i32) {
    %c0_i32 = arith.constant 0 : i32
    %c0_i32_0 = arith.constant 0 : i32
    return %arg0, %c0_i32 : i32, i32
  }
}

</mosaic_0001>

<bundles_post_ra>
// kernel: tpu_custom_call.1
= control target key start
LH: loop header
LB: loop body
LE: loop exit
PB: predicated region body
PF: predicated region fallthrough
CT: control target
= control target key end

     0   :  { %s1036_s21 = smov 0   ;;  %s1038_s22 = smov 0   ;;  %s1158_s0 = inlined_call_operand.vmem [shape: f32[24,16], index: 0, kind: input, shape index: {}]   ;;  %s1159_s1 = inlined_call_operand.vmem [shape: f32[16,128], index: 1, kind: input, shape index: {}]   ;;  %s1160_s2 = inlined_call_operand.vmem [shape: f32[1,128], index: 2, kind: input, shape index: {}]   ;;  %s1161_s3 = inlined_call_operand.vmem [shape: f32[1,128], index: 3, kind: input, shape index: {}]   ;;  %s1162_s4 = inlined_call_operand.vmem [shape: bf16[128,8], index: 4, kind: input, shape index: {}]   ;;  %s1163_s5 = inlined_call_operand.vmem [shape: f32[1,8], index: 5, kind: input, shape index: {}]   ;;  %s1164_s6 = inlined_call_operand.vmem [shape: f32[24,8], index: 6, kind: output, shape index: {}]  }
   0x1   :  { %s1040_s23 = smov 0  }
   0x2 LB: > { %s1049_s24 = sadd.s32 4294967295, %s965_s23   ;;  %s1051_s25 = sadd.s32 1, %s965_s23   ;;  %s965_s23 = sphi %s1040_s23, %s1168_s23   ;;  %s961_s22 = sphi %s1038_s22, %s1167_s22   ;;  %s957_s21 = sphi %s1036_s21, %s1166_s21  }
   0x3   : > { %s151_s26 = ssub.s32 %s965_s23, %s1051_s25  ;;  %s154_s27 = sadd.s32 1, %s961_s22 }
   0x4   : > { %p152_p0 = scmp.eq.s32.totalorder %s151_s26, 0  ;;  %p164_p1 = scmp.ne.s32.totalorder %s961_s22, %s957_s21 }
   0x5   : > { %p165_p2 = scmp.eq.s32.totalorder %s1049_s24, 1  ;;  %p728_p3 = scmp.ge.s32.totalorder %s965_s23, 1 }
   0x6   : > { %s1059_s28 = scalar_select %p152_p0, %s961_s22, %s154_s27  }
   0x7   : > { %p1061_p4 = por %p165_p2, %p164_p1  ;;  %p221_p5 = scmp.lt.s32.totalorder %s965_s23, 3 }
   0x9   : > { %p222_p6 = pnand %p728_p3, %p221_p5 }
   0xa   : > { %v285_v0 = vld [vmem:[%s1159_s1] sm:$0xff] (!%p222_p6)  ;;  %v286_v1 = vld [vmem:[%s1159_s1 + $0x8] sm:$0xff] (!%p222_p6)  ;;  %s1072_s10 = sshll.u32 (!%p222_p6), %s1049_s24, 1  ;;  %v999_v4 = vmov (!%p222_p6), 0.0   ;;  %vm278_vm0 = vcmask (!%p222_p6), 130048   ;;  %v901_v12 = vld [vmem:[%s1162_s4 + $0x10] sm:$0xff] (!%p222_p6)  }
   0xb   : > { %225 = sbr.rel (%p222_p6) target bundleno = 522 (0x20a), region = 44  ;;  %v899_v2 = vld [vmem:[%s1162_s4] sm:$0xff] (!%p222_p6)   ;;  %v805_v3 = vpack.c.bf16 (!%p222_p6), %v286_v1, %v285_v0  ;;  %p259_p7 = scmp.lt.s32.totalorder (!%p222_p6), %s1072_s10, 2  ;;  %785 = vmatprep.subr.bf16.mxu1 (!%p222_p6), %v999_v4  ;;  %v900_v5 = vld [vmem:[%s1162_s4 + $0x8] sm:$0xff] (!%p222_p6)   ;;  %v902_v13 = vld [vmem:[%s1162_s4 + $0x18] sm:$0xff] (!%p222_p6)   ;;  %vm1000_vm1 = vmmov (!%p222_p6), 0  }
   0xc   : > { %786 = vmatpush3.bf16.msra.mxu1 (!%p222_p6), %v899_v2  ;;  %v903_v14 = vld [vmem:[%s1162_s4 + $0x20] sm:$0xff] (!%p222_p6)   ;;  %v904_v15 = vld [vmem:[%s1162_s4 + $0x28] sm:$0xff] (!%p222_p6)   ;;  %801 = vmatprep.mubr.msk.bf16.mxu1 (!%p222_p6), %vm1000_vm1, %v999_v4  ;;  %v905_v16 = vld [vmem:[%s1162_s4 + $0x30] sm:$0xff] (!%p222_p6)   ;;  %vm503_vm2 = vcmask (!%p222_p6), 64512  }
   0xd   : > { %806 = vmatprep.subr.bf16.mxu0 (!%p222_p6), %v805_v3  ;;  %787 = vmatprep.subr.bf16.mxu1 (!%p222_p6), %v999_v4  ;;  %v906_v17 = vld [vmem:[%s1162_s4 + $0x38] sm:$0xff] (!%p222_p6)   ;;  %v732_v20 = vld [vmem:[%s1160_s2] ss:$0 sm:$0xff] (!%p222_p6) }
   0xe   : > { %808 = vmatpush3.bf16.msra.mxu0 (!%p222_p6), %v805_v3  ;;  %v735_v24 = vld [vmem:[%s1161_s3] ss:$0 sm:$0xff] (!%p222_p6) }
   0xf   : > { %v736_v35 = vld [vmem:[%s1163_s5] ss:$0 sm:$0xff] (!%p222_p6) }
  0x10   : > { %788 = vmatpush3.bf16.msra.mxu1 (!%p222_p6), %v900_v5 }
  0x11   : > { %789 = vmatprep.subr.bf16.mxu1 (!%p222_p6), %v999_v4 }
  0x12   : > { %s260_s15 = scalar_select %p259_p7, %s1072_s10, 2 }
  0x13   : > { %s762_s30 = sshll.u32 (%p1061_p4), %s1049_s24, 4 }
  0x14   : > { %s731_s16 = sshll.u32 %s260_s15, 3  ;;  %790 = vmatpush3.bf16.msra.mxu1 %v901_v12  ;;  %s1124_s9 = scalar_lea.vmem (%p1061_p4), %s1164_s6, %s762_s30  }
  0x15   : > { %s262_s19 = scalar_lea.vmem %s1158_s0, %s731_s16  ;;  %791 = vmatprep.subr.bf16.mxu1 %v999_v4 }
  0x16   : > { %v274_v6 = vld [vmem:[%s262_s19] sm:$0xff]  ;;  %v275_v7 = vld [vmem:[%s262_s19 + $0x8] sm:$0xff]  ;;  %s251_s19 = sand.u32 1, %s957_s21   ;;  %s514_s21 = ssub.s32 (%p1061_p4), 3, %s1072_s10 }
  0x17   : > { %v276_v8 = vmul.f32 %v274_v6, %v274_v6  ;;  %782 = vmatprep.mubr.msk.f32.mxu0 %vm278_vm0, %v274_v6  ;;  %v277_v9 = vmul.f32 %v275_v7, %v275_v7  ;;  %s729_s20 = sshll.u32 %s251_s19, 4  ;;  %p515_p8 = scmp.lt.s32.totalorder (%p1061_p4), %s514_s21, 2 }
  0x18   : > { %783 = vmatmul.mubr.msk.f32.vlgmr.msra.gmra.mrb[0].mxu0 %vm278_vm0, %v275_v7  ;;  %792 = vmatpush3.bf16.msra.mxu1 %v902_v13  ;;  %s1113_s27 = scalar_lea.vmem [#allocation2], %s729_s20  }
  0x19   : > { %v279_v10 = vsel %vm278_vm0, %v276_v8, 0.0  ;;  %v282_v11 = vsel %vm278_vm0, %v277_v9, 0.0  ;;  %793 = vmatprep.subr.bf16.mxu1 %v999_v4 }
  0x1a   : > { %280 = vadd.xlane.f32.xlu0 %v279_v10 }
  0x1c   : > { %794 = vmatpush3.bf16.msra.mxu1 %v903_v14 }
  0x1d   : > { %795 = vmatprep.subr.bf16.mxu1 %v999_v4 }
  0x1e   : > { %283 = vadd.xlane.f32.xlu0 %v282_v11 }
  0x20   : > { %796 = vmatpush3.bf16.msra.mxu1 %v904_v15 }
  0x21   : > { %797 = vmatprep.subr.bf16.mxu1 %v999_v4 }
  0x24   : > { %798 = vmatpush3.bf16.msra.mxu1 %v905_v16 }
  0x25   : > { %799 = vmatprep.subr.bf16.mxu1 %v999_v4 }
  0x28   : > { %800 = vmatpush3.bf16.msra.mxu1 %v906_v17 }
  0xa7   : > { %v281_v18 = vpop.xlane.xlu0 %280 }
  0xa8   : > { %v294_v22 = vmul.f32 %v732_v20, %v281_v18 }
  0xab   : > { %v284_v19 = vpop.xlane.xlu0 %283 }
  0xac   : > { %v295_v21 = vmul.f32 %v732_v20, %v284_v19 }
  0xeb   : > { %v784_v23 = vpop.f32.mrb[0].mxu0 }
  0xec   : > { %v374_v25 = vadd.f32 %v784_v23, %v295_v21  ;;  %v368_v26 = vpop.f32.mrb[1].mxu0 }
  0xed   : > { %v369_v27 = vadd.f32 %v368_v26, %v294_v22 }
  0xee   : > { %v385_v28 = vadd.f32 %v735_v24, %v374_v25 }
  0xef   : > { %v384_v29 = vadd.f32 %v735_v24, %v369_v27 }
  0xf0   : > { %v388_v30 = vmul.f32 1.442695, %v385_v28 }
  0xf1   : > { %v386_v31 = vmul.f32 1.442695, %v384_v29 }
  0xf2   : > { %907 = vpow2.f32 %v388_v30 }
  0xf3   : > { %909 = vpow2.f32 %v386_v31 }
  0xfc   : > { %v908_v32 = vpop.eup %907 }
  0xfd   : > { %v910_v33 = vpop.eup %909 }
  0xfe   : > { %v390_v34 = vpack.c.bf16 %v908_v32, %v910_v33 }
 0x100   : > { %802 = vmatmul.mubr.bf16.vlgmr.msra.gmra.mrb[0].mxu1 %v390_v34 }
 0x1d2   : > { %512 = sbr.rel (!%p1061_p4) target bundleno = 522 (0x20a), region = 48 }
 0x1d3   : > { %v496_v36 = vpop.f32.mrb[0].mxu1 }
 0x1d4   : > { %v497_v37 = vadd.f32 %v736_v35, %v496_v36  ;;  %v803_v38 = vpop.f32.mrb[1].mxu1 }
 0x1d5   : > { %v499_v39 = vpop.f32.mrb[2].mxu1 }
 0x1d6   : > { %504 = vst.msk [vmem:[%s1113_s27] sm:$0xff] %vm503_vm2, %v497_v37  ;;  %v500_v40 = vadd.f32 %v736_v35, %v499_v39  ;;  %v804_v41 = vpop.f32.mrb[3].mxu1 }
 0x1d8   : > { %505 = vst.msk [vmem:[%s1113_s27 + $0x8] sm:$0xff] %vm503_vm2, %v500_v40 }
 0x1d9   : > { %s1170_s21 = smov (!%p515_p8, %s514_s21), 2 }
 0x1da   : > { %s747_s11 = sshll.u32 %s1170_s21, 7 }
 0x1db   : > { %p750_p9 = scmp.eq.s32.totalorder %s747_s11, 0 }
 0x1dc   : > { %s1130_s12 = sshrl.u32 (!%p750_p9), %s1170_s21, 1 }
 0x1dd   : > { %523 = sbr.rel (%p750_p9) target bundleno = 522 (0x20a), region = 52  ;;  %p751_p10 = scmp.le.s32.totalorder (!%p750_p9), %s1130_s12, 0 }
 0x1e4   : > { %681 = sbr.rel (%p751_p10) target bundleno = 501 (0x1f5), region = 128  ;;  %s967_s24 = smov (!%p751_p10), %s1124_s9  }
 0x1e5   : > { %s971_s29 = smov (!%p751_p10), %s1113_s27   ;;  %s975_s10 = smov (!%p751_p10), 0  }
 0x1e6   : > { %s979_s13 = smov (!%p751_p10), 0  }
 0x1eb LB: >> { %v587_v42 = vld [vmem:[%s973_s29] sm:$0xff]  ;;  %v589_v43 = vld [vmem:[%s973_s29 + $0x8] sm:$0xff]  ;;  %s591_s14 = sadd.s32 1, %s977_s10  ;;  %s581_s13 = sadd.s32 1, %s981_s13   ;;  %s981_s13 = sphi %s979_s13, %s581_s13   ;;  %s977_s10 = sphi %s975_s10, %s976_s10   ;;  %s973_s29 = sphi %s971_s29, %s596_s29   ;;  %s969_s24 = sphi %s967_s24, %s597_s24  }
 0x1ec   : >> { %588 = vst [vmem:[%s969_s24] sm:$0xff] %v587_v42  ;;  %590 = vst [vmem:[%s969_s24 + $0x8] sm:$0xff] %v589_v43  ;;  %p592_p11 = scmp.ge.s32.totalorder %s591_s14, %s1130_s12  ;;  %p580_p12 = scmp.ge.s32.totalorder %s581_s13, %s1130_s12 }
 0x1ee   : >> { %s1172_s14 = smov (%p592_p11, %s591_s14), 0  ;;  %583 = sbr.rel (!%p580_p12) target bundleno = 491 (0x1eb), region = 134 }
 0x1ef   : >> { %s752_s15 = sshll.u32 %s1172_s14, 4  ;;  %s976_s10 = smov %s1172_s14  }
 0x1f0   : >> { %s596_s29 = scalar_lea.vmem %s1113_s27, %s752_s15 [#allocation2]   ;;  %s597_s24 = scalar_lea.vmem %s1124_s9, %s752_s15  }
 0x1f5 PF: > { %s1140_s16 = sand.u32 1, %s1170_s21   ;;  %s763_s17 = sshll.u32 %s1130_s12, 4 }
 0x1f6   : > { %s602_s18 = scalar_lea.vmem %s1113_s27, %s763_s17 [#allocation2]   ;;  %s604_s19 = scalar_lea.vmem %s1124_s9, %s763_s17  }
 0x1f7   : > { %p757_p13 = scmp.le.s32.totalorder %s1140_s16, 0 }
 0x1f8   : > { %s983_s20 = smov (!%p757_p13), %s604_s19   ;;  %s987_s23 = smov (!%p757_p13), %s602_s18  }
 0x1f9   : > { %695 = sbr.rel (%p757_p13) target bundleno = 522 (0x20a), region = 139  ;;  %s991_s26 = smov (!%p757_p13), 0  }
 0x1fa   : > { %s995_s30 = smov (!%p757_p13), 0  }
 0x200 LB: >> { %v614_v44 = vld [vmem:[%s989_s23] sm:$0xff]  ;;  %s616_s21 = sadd.s32 1, %s993_s26  ;;  %s608_s30 = sadd.s32 1, %s997_s30   ;;  %s997_s30 = sphi %s995_s30, %s608_s30   ;;  %s993_s26 = sphi %s991_s26, %s992_s26   ;;  %s989_s23 = sphi %s987_s23, %s621_s23   ;;  %s985_s20 = sphi %s983_s20, %s622_s20  }
 0x201   : >> { %615 = vst [vmem:[%s985_s20] sm:$0xff] %v614_v44  ;;  %p617_p0 = scmp.ge.s32.totalorder %s616_s21, %s1140_s16  ;;  %p607_p1 = scmp.ge.s32.totalorder %s608_s30, %s1140_s16 }
 0x203   : >> { %s1174_s21 = smov (%p617_p0, %s616_s21), 0  ;;  %610 = sbr.rel (!%p607_p1) target bundleno = 512 (0x200), region = 145 }
 0x204   : >> { %s758_s27 = sshll.u32 %s1174_s21, 3  ;;  %s992_s26 = smov %s1174_s21  }
 0x205   : >> { %s621_s23 = scalar_lea.vmem %s602_s18, %s758_s27 [#allocation2]   ;;  %s622_s20 = scalar_lea.vmem %s604_s19, %s758_s27  }
 0x20a PF: > { %p13_p2 = scmp.ge.s32.totalorder %s1051_s25, 4   ;;  %s1166_s21 = smov %s961_s22 }
 0x20b   : > { %s1167_s22 = smov %s1059_s28  ;;  %s1168_s23 = smov %s1051_s25 }
 0x20c   :  { %15 = sbr.rel (!%p13_p2) target bundleno = 2 (0x2), region = 156 }

</bundles_post_ra>
